<compile_context>
chip_gen: v7x
topology: tpu7x:2x2x1
jax: 0.10.0
libtpu: 0.0.40
codegen_flags: <defaults>
</compile_context>

<pallas_src>
import functools

import jax
import jax.numpy as jnp
from jax import lax
from jax.experimental import pallas as pl
from jax.experimental.pallas import tpu as pltpu


def _round_up(x, m):
    return -(-x // m) * m


def _clustering_kernel(x_ref, wt_ref, wsq_ref, o_ref, *, alpha, num_clusters):
    x = x_ref[...].astype(jnp.float32)          # (tm, D)
    wt = wt_ref[...]                            # (D, K_pad) f32, pre-transposed
    w_sq = wsq_ref[...]                         # (1, K_pad) f32, precomputed

    # squared Euclidean distance: ||x||^2 - 2 x.w^T + ||w||^2 (cross term on MXU)
    x_sq = jnp.sum(x * x, axis=-1, keepdims=True)                    # (tm, 1)
    cross = jnp.dot(x, wt, preferred_element_type=jnp.float32)       # (tm, K_pad)
    norm_ = jnp.maximum(x_sq - 2.0 * cross + w_sq, 0.0)              # clamp cancellation

    # Student's t kernel: (1 + norm/alpha)^(-(alpha+1)/2)
    numerator = pl.reciprocal(1.0 + norm_ * (1.0 / alpha))           # EUP reciprocal
    power = (alpha + 1.0) / 2.0
    if power != 1.0:          # compile-time specialization: alpha == 1 skips the pow
        numerator = numerator ** power

    # zero out padded cluster columns so they do not pollute the row sum
    k_pad = numerator.shape[-1]
    if num_clusters != k_pad:
        col = lax.broadcasted_iota(jnp.int32, numerator.shape, 1)
        numerator = jnp.where(col < num_clusters, numerator, 0.0)

    # normalize over clusters (row-wise), reciprocal instead of divide
    denom = jnp.sum(numerator, axis=1, keepdims=True)                # (tm, 1)
    o_ref[...] = (numerator * pl.reciprocal(denom)).astype(o_ref.dtype)


def clustering_layer(batch, weight, alpha=1.0, *, tm=None):
    """Soft cluster assignment q (Student's t kernel), shapes:
       batch  : (N, D) float32
       weight : (K, D) float32  (cluster centers)
       returns: (N, K) float32
    """
    N, D = batch.shape
    K, D2 = weight.shape
    assert D == D2

    # lane-dense cluster dimension
    K_pad = _round_up(K, 128)

    # weight-side precompute (done once, outside the grid loop)
    w = weight.astype(jnp.float32)
    w_pad = jnp.pad(w, ((0, K_pad - K), (0, 0)))          # (K_pad, D), zero rows
    wt = w_pad.T                                          # (D, K_pad)
    w_sq = jnp.sum(w_pad * w_pad, axis=-1)[None, :]       # (1, K_pad)

    # row tile from an explicit VMEM budget (safe on v5e/v6e/v7x scoped defaults)
    if tm is None:
        budget = 12 * 1024 * 1024 - 4 * (D * K_pad + K_pad)   # bytes left for tiles
        per_row = 2 * 4 * (D + K_pad)                         # double-buffered x + q, f32
        tm = max(8, min(1024, budget // per_row))
    tm = min(int(tm), _round_up(N, 8))
    tm = max(8, (tm // 8) * 8)

    N_pad = _round_up(N, tm)
    x = batch.astype(jnp.float32)
    if N_pad != N:
        x = jnp.pad(x, ((0, N_pad - N), (0, 0)))

    kernel = functools.partial(
        _clustering_kernel, alpha=float(alpha), num_clusters=K)

    q_pad = pl.pallas_call(
        kernel,
        out_shape=jax.ShapeDtypeStruct((N_pad, K_pad), jnp.float32),
        grid_spec=pltpu.PrefetchScalarGridSpec(
            num_scalar_prefetch=0,
            grid=(N_pad // tm,),
            in_specs=[
                pl.BlockSpec((tm, D), lambda i: (i, 0)),      # batch row tile
                pl.BlockSpec((D, K_pad), lambda i: (0, 0)),   # w^T (resident)
                pl.BlockSpec((1, K_pad), lambda i: (0, 0)),   # ||w||^2 (resident)
            ],
            out_specs=pl.BlockSpec((tm, K_pad), lambda i: (i, 0)),
        ),
        compiler_params=pltpu.CompilerParams(
            dimension_semantics=("parallel",),
            vmem_limit_bytes=32 * 1024 * 1024),
    )(x, wt, w_sq)

    return q_pad[:N, :K]


def _reference(batch, weight, alpha=1.0):
    # pure-JAX reference, mirrors the PyTorch forward literally
    norm_ = jnp.sum((batch[:, None, :] - weight[None, :, :]) ** 2, axis=2)
    numerator = 1.0 / (1.0 + norm_ / alpha)
    power = (alpha + 1.0) / 2.0
    numerator = numerator ** power
    return numerator / jnp.sum(numerator, axis=1, keepdims=True)


def _xavier_uniform(key, shape, dtype=jnp.float32):
    # matches torch.nn.init.xavier_uniform_ for a 2-D tensor (fan_out, fan_in)
    fan_out, fan_in = shape
    bound = (6.0 / (fan_in + fan_out)) ** 0.5
    return jax.random.uniform(key, shape, dtype, minval=-bound, maxval=bound)


if __name__ == "__main__":
    key = jax.random.PRNGKey(0)
    k_x, k_w, k_x2, k_w2 = jax.random.split(key, 4)

    # case 1: module defaults (embedded_dimension=32, num_clusters=8, alpha=1.0)
    N, D, K, alpha = 16, 32, 8, 1.0
    batch = jax.random.normal(k_x, (N, D), dtype=jnp.float32)
    weight = _xavier_uniform(k_w, (K, D))
    q = jax.block_until_ready(clustering_layer(batch, weight, alpha))
    q_ref = _reference(batch, weight, alpha)
    assert q.shape == (N, K)
    assert jnp.allclose(q, q_ref, atol=1e-5, rtol=1e-5), "mismatch vs reference (alpha=1)"
    assert jnp.allclose(jnp.sum(q, axis=1), 1.0, atol=1e-5), "rows must sum to 1"

    # case 2: ragged batch, non-multiple K, alpha != 1 (general pow path + padding/mask)
    N2, D2, K2, alpha2 = 50, 32, 10, 2.0
    batch2 = jax.random.normal(k_x2, (N2, D2), dtype=jnp.float32)
    weight2 = _xavier_uniform(k_w2, (K2, D2))
    q2 = jax.block_until_ready(clustering_layer(batch2, weight2, alpha2))
    q2_ref = _reference(batch2, weight2, alpha2)
    assert q2.shape == (N2, K2)
    assert jnp.allclose(q2, q2_ref, atol=1e-5, rtol=1e-5), "mismatch vs reference (alpha=2)"
    assert jnp.allclose(jnp.sum(q2, axis=1), 1.0, atol=1e-5), "rows must sum to 1"

    print("KERNEL_OK")
</pallas_src>

<mosaic_0001>
module attributes {stable_mosaic.version = 11 : i64} {
  func.func @_clustering_kernel(%arg0: i32, %arg1: memref<16x32xf32, #tpu.memory_space<vmem>>, %arg2: memref<32x128xf32, #tpu.memory_space<vmem>>, %arg3: memref<1x128xf32, #tpu.memory_space<vmem>>, %arg4: memref<16x128xf32, #tpu.memory_space<vmem>>) attributes {dimension_semantics = [#tpu.dimension_semantics<parallel>], iteration_bounds = array<i64: 1>, scalar_prefetch = 0 : i64, scratch_operands = 0 : i64, tpu.core_type = #tpu.core_type<tc>, window_params = [{transform_indices = @transform_0, window_bounds = array<i64: 16, 32>}, {pipeline_mode = #tpu.pipeline_mode<synchronous>, transform_indices = @transform_1, window_bounds = array<i64: 32, 128>}, {pipeline_mode = #tpu.pipeline_mode<synchronous>, transform_indices = @transform_2, window_bounds = array<i64: 1, 128>}, {transform_indices = @transform_3, window_bounds = array<i64: 16, 128>}]} {
    %c0 = arith.constant 0 : index
    %c0_0 = arith.constant 0 : index
    %0 = vector.load %arg1[%c0, %c0_0] : memref<16x32xf32, #tpu.memory_space<vmem>>, vector<16x32xf32>
    %c0_1 = arith.constant 0 : index
    %c0_2 = arith.constant 0 : index
    %1 = vector.load %arg2[%c0_1, %c0_2] : memref<32x128xf32, #tpu.memory_space<vmem>>, vector<32x128xf32>
    %c0_3 = arith.constant 0 : index
    %c0_4 = arith.constant 0 : index
    %2 = vector.load %arg3[%c0_3, %c0_4] : memref<1x128xf32, #tpu.memory_space<vmem>>, vector<1x128xf32>
    %3 = arith.mulf %0, %0 : vector<16x32xf32>
    %cst = arith.constant dense<0.000000e+00> : vector<16xf32>
    %4 = vector.multi_reduction <add>, %3, %cst [1] : vector<16x32xf32> to vector<16xf32>
    %5 = vector.shape_cast %4 : vector<16xf32> to vector<16x1xf32>
    %cst_5 = arith.constant dense<0.000000e+00> : vector<16x128xf32>
    %6 = tpu.matmul %0, %1, %cst_5 {dimension_numbers = #tpu.dot_dimension_numbers<[1], [0], [0], [1], [0, 0, 1, 1], [], []>} : vector<16x32xf32>, vector<32x128xf32>, vector<16x128xf32> -> vector<16x128xf32>
    %cst_6 = arith.constant 2.000000e+00 : f32
    %7 = vector.broadcast %cst_6 : f32 to vector<16x128xf32>
    %8 = arith.mulf %7, %6 : vector<16x128xf32>
    %9 = vector.broadcast %5 : vector<16x1xf32> to vector<16x128xf32>
    %10 = arith.subf %9, %8 : vector<16x128xf32>
    %11 = vector.broadcast %2 : vector<1x128xf32> to vector<16x128xf32>
    %12 = arith.addf %10, %11 : vector<16x128xf32>
    %cst_7 = arith.constant 0.000000e+00 : f32
    %13 = vector.broadcast %cst_7 : f32 to vector<16x128xf32>
    %14 = arith.maximumf %12, %13 : vector<16x128xf32>
    %cst_8 = arith.constant 1.000000e+00 : f32
    %15 = vector.broadcast %cst_8 : f32 to vector<16x128xf32>
    %16 = arith.mulf %14, %15 : vector<16x128xf32>
    %cst_9 = arith.constant 1.000000e+00 : f32
    %17 = vector.broadcast %cst_9 : f32 to vector<16x128xf32>
    %18 = arith.addf %17, %16 : vector<16x128xf32>
    %19 = tpu.reciprocal %18 : vector<16x128xf32> -> vector<16x128xf32>
    %20 = tpu.iota {dimensions = array<i32: 1>} : vector<16x128xi32>
    %c8_i32 = arith.constant 8 : i32
    %21 = vector.broadcast %c8_i32 : i32 to vector<16x128xi32>
    %22 = arith.cmpi slt, %20, %21 : vector<16x128xi32>
    %cst_10 = arith.constant 0.000000e+00 : f32
    %23 = vector.broadcast %cst_10 : f32 to vector<16x128xf32>
    %24 = arith.select %22, %19, %23 : vector<16x128xi1>, vector<16x128xf32>
    %cst_11 = arith.constant dense<0.000000e+00> : vector<16xf32>
    %25 = vector.multi_reduction <add>, %24, %cst_11 [1] : vector<16x128xf32> to vector<16xf32>
    %26 = vector.shape_cast %25 : vector<16xf32> to vector<16x1xf32>
    %27 = tpu.reciprocal %26 : vector<16x1xf32> -> vector<16x1xf32>
    %28 = vector.broadcast %27 : vector<16x1xf32> to vector<16x128xf32>
    %29 = arith.mulf %24, %28 : vector<16x128xf32>
    %c0_12 = arith.constant 0 : index
    %c0_13 = arith.constant 0 : index
    %30 = vector.load %arg4[%c0_12, %c0_13] : memref<16x128xf32, #tpu.memory_space<vmem>>, vector<16x128xf32>
    tpu.vector_store %arg4[%c0_12, %c0_13], %29 {strides = array<i32>} : memref<16x128xf32, #tpu.memory_space<vmem>>, vector<16x128xf32>,
    return
  }
  func.func @transform_0(%arg0: i32) -> (i32, i32) {
    %c0_i32 = arith.constant 0 : i32
    %c0_i32_0 = arith.constant 0 : i32
    return %arg0, %c0_i32 : i32, i32
  }
  func.func @transform_1(%arg0: i32) -> (i32, i32) {
    %c0_i32 = arith.constant 0 : i32
    %c0_i32_0 = arith.constant 0 : i32
    %c0_i32_1 = arith.constant 0 : i32
    return %c0_i32, %c0_i32_0 : i32, i32
  }
  func.func @transform_2(%arg0: i32) -> (i32, i32) {
    %c0_i32 = arith.constant 0 : i32
    %c0_i32_0 = arith.constant 0 : i32
    %c0_i32_1 = arith.constant 0 : i32
    return %c0_i32, %c0_i32_0 : i32, i32
  }
  func.func @transform_3(%arg0: i32) -> (i32, i32) {
    %c0_i32 = arith.constant 0 : i32
    %c0_i32_0 = arith.constant 0 : i32
    return %arg0, %c0_i32 : i32, i32
  }
}

</mosaic_0001>

<bundles_post_ra>
// kernel: tpu_custom_call.1
= control target key start
LH: loop header
LB: loop body
LE: loop exit
PB: predicated region body
PF: predicated region fallthrough
CT: control target
= control target key end

     0   :  { %8 = vsyncpa [#allocation3], 0  ;;  %s381_s0 = inlined_call_operand.hbm [shape: f32[16,32], index: 0, kind: input, shape index: {}]   ;;  %s382_s1 = inlined_call_operand.hbm [shape: f32[32,128], index: 1, kind: input, shape index: {}]   ;;  %s383_s2 = inlined_call_operand.vmem [shape: f32[1,128], index: 2, kind: input, shape index: {}]   ;;  %s384_s3 = inlined_call_operand.hbm [shape: f32[16,128], index: 3, kind: output, shape index: {}]  }
   0x1   :  { %9 = vsyncpa [#allocation6], 0 }
   0x2   :  { %10 = vsyncpa [#allocation4], 0  ;;  %s304_s12 = smov [#allocation2]   ;;  %s232_s16 = scalar_lea.hbm %s381_s0, 256 }
   0x3   :  { %s16_s13 = sshll.u32 %s304_s12, 4  ;;  %p233_p0 = scmp.ne.s32.totalorder %s381_s0, %s232_s16  ;;  %s17_s13 = int_to_ptr.vmem [resolvable:$true] %s16_s13 }
   0x4   :  { %p236_p1 = scmp.lt.u32.totalorder %s232_s16, %s381_s0 }
   0x6   :  { %p238_p2 = pnand %p236_p1, %p233_p0 }
   0x8   :  { %241 = shalt.err (!%p238_p2)
}
   0x9   :  { %s242_s21 = scalar_lea.vmem %s17_s13, 256  ;;  %p247_p4 = scmp.lt.s32.totalorder %s17_s13, %s17_s13 }
   0xa   :  { %p243_p3 = scmp.ne.s32.totalorder %s17_s13, %s242_s21  ;;  %p248_p5 = scmp.lt.s32.totalorder %s242_s21, %s242_s21 }
   0xc   :  { %p249_p6 = por %p248_p5, %p247_p4 }
   0xe   :  { %p250_p7 = pnand %p249_p6, %p243_p3 }
  0x10   :  { %253 = shalt.err (!%p250_p7)
}
  0x11   :  { %s305_s22 = smov 128   ;;  %s306_s23 = smov 8  }
  0x12   :  { %22 = dma.hbm_to_vmem [thread:$0]  %s381_s0, 256, %s17_s13, [#allocation3], %s305_s22, %s305_s22, %s306_s23  }
  0x13   :  { %s307_s26 = smov [#allocation5]   ;;  %s254_s30 = scalar_lea.hbm %s382_s1, 512 }
  0x14   :  { %s28_s27 = sshll.u32 %s307_s26, 4  ;;  %p255_p8 = scmp.ne.s32.totalorder %s382_s1, %s254_s30  ;;  %s29_s27 = int_to_ptr.vmem [resolvable:$true] %s28_s27 }
  0x15   :  { %p258_p9 = scmp.lt.u32.totalorder %s254_s30, %s382_s1 }
  0x17   :  { %p260_p10 = pnand %p258_p9, %p255_p8 }
  0x19   :  { %263 = shalt.err (!%p260_p10)
}
  0x1a   :  { %s264_s8 = scalar_lea.vmem %s29_s27, 512  ;;  %p269_p12 = scmp.lt.s32.totalorder %s29_s27, %s29_s27 }
  0x1b   :  { %p265_p11 = scmp.ne.s32.totalorder %s29_s27, %s264_s8  ;;  %p270_p13 = scmp.lt.s32.totalorder %s264_s8, %s264_s8 }
  0x1d   :  { %p271_p0 = por %p270_p13, %p269_p12 }
  0x1f   :  { %p272_p1 = pnand %p271_p0, %p265_p11 }
  0x21   :  { %275 = shalt.err (!%p272_p1)
}
  0x22   :  { %34 = dma.hbm_to_vmem [thread:$0]  %s382_s1, 512, %s29_s27, [#allocation6], %s305_s22, %s305_s22, %s306_s23  }
  0x23   :  { %298 = dma.done.wait [#allocation3], 256  }
  0x24   :  { %299 = vsyncadd [#allocation3], 4294967040 }
  0x25   :  { %300 = dma.done.wait [#allocation6], 512  }
  0x26   :  { %301 = vsyncadd [#allocation6], 4294966784  ;;  %vm52_vm0 = vcmask 261120   ;;  %v45_v0 = vld [vmem:[#allocation5] sm:$0xff]  ;;  %v46_v1 = vld [vmem:[#allocation5 + $0x8] sm:$0xff]  ;;  %v158_v27 = vlaneseq }
  0x27   :  { %v47_v2 = vld [vmem:[#allocation5 + $0x10] sm:$0xff]  ;;  %v211_v3 = vpack.c.bf16 %v46_v1, %v45_v0  ;;  %v48_v4 = vld [vmem:[#allocation5 + $0x18] sm:$0xff] }
  0x28   :  { %v43_v5 = vld [vmem:[#allocation2] sm:$0xff]  ;;  %v44_v6 = vld [vmem:[#allocation2 + $0x8] sm:$0xff]  ;;  %v215_v7 = vpack.c.bf16 %v48_v4, %v47_v2  ;;  %v159_v28 = vand.u32 127, %v158_v27 }
  0x29   :  { %v50_v8 = vmul.f32 %v43_v5, %v43_v5  ;;  %208 = vmatprep.mubr.msk.f32.mxu0 %vm52_vm0, %v43_v5  ;;  %v51_v9 = vmul.f32 %v44_v6, %v44_v6  ;;  %212 = vmatprep.subr.bf16.mxu0 %v211_v3  ;;  %v193_v18 = vld [vmem:[%s383_s2] ss:$0 sm:$0xff]  ;;  %s308_s2 = smov [#allocation7]  }
  0x2a   :  { %214 = vmatpush3.bf16.msra.mxu0 %v211_v3  ;;  %vm160_vm1 = vcmp.lt.s32.totalorder %v159_v28, 8  ;;  %s178_s11 = sshll.u32 %s308_s2, 4  ;;  %s179_s11 = int_to_ptr.vmem [resolvable:$true] %s178_s11 }
  0x2b   :  { %v53_v10 = vsel %vm52_vm0, %v50_v8, 0.0  ;;  %216 = vmatprep.subr.bf16.mxu0 %v215_v7  ;;  %v56_v11 = vsel %vm52_vm0, %v51_v9, 0.0  ;;  %s276_s12 = scalar_lea.vmem %s179_s11, 256  ;;  %p281_p3 = scmp.lt.s32.totalorder %s179_s11, %s179_s11 }
  0x2c   :  { %54 = vadd.xlane.f32.xlu0 %v53_v10  ;;  %p277_p2 = scmp.ne.s32.totalorder %s179_s11, %s276_s12  ;;  %p282_p4 = scmp.lt.s32.totalorder %s276_s12, %s276_s12 }
  0x2e   :  { %218 = vmatpush3.bf16.msra.mxu0 %v215_v7  ;;  %p283_p5 = por %p282_p4, %p281_p3 }
  0x30   :  { %57 = vadd.xlane.f32.xlu0 %v56_v11  ;;  %p284_p6 = pnand %p283_p5, %p277_p2 }
  0x31   :  { %209 = vmatmul.mubr.msk.f32.vlgmr.msra.gmra.mrb[0].mxu0 %vm52_vm0, %v44_v6 }
  0xb9   :  { %v55_v12 = vpop.xlane.xlu0 %54 }
  0xbd   :  { %v58_v14 = vpop.xlane.xlu0 %57 }
 0x104   :  { %v210_v13 = vpop.f32.mrb[0].mxu0 }
 0x105   :  { %v141_v15 = vmul.f32 2.0, %v210_v13  ;;  %v131_v16 = vpop.f32.mrb[1].mxu0 }
 0x106   :  { %v140_v17 = vmul.f32 2.0, %v131_v16 }
 0x107   :  { %v143_v19 = vsub.f32 %v58_v14, %v141_v15 }
 0x108   :  { %v142_v20 = vsub.f32 %v55_v12, %v140_v17 }
 0x109   :  { %v151_v21 = vadd.f32 %v193_v18, %v143_v19 }
 0x10a   :  { %v150_v22 = vadd.f32 %v193_v18, %v142_v20 }
 0x10b   :  { %v153_v23 = vmax.f32 %v151_v21, 0.0 }
 0x10c   :  { %v152_v24 = vmax.f32 %v150_v22, 0.0 }
 0x10d   :  { %v155_v26 = vadd.f32 1.0, %v153_v23 }
 0x10e   :  { %v154_v25 = vadd.f32 1.0, %v152_v24 }
 0x110   :  { %224 = vrcp.f32 %v154_v25 }
 0x111   :  { %226 = vrcp.f32 %v155_v26 }
 0x11a   :  { %v225_v29 = vpop.eup %224 }
 0x11b   :  { %v161_v30 = vsel %vm160_vm1, %v225_v29, 0.0  ;;  %v227_v31 = vpop.eup %226 }
 0x11c   :  { %163 = vadd.xlane.f32.xlu1 %v161_v30  ;;  %v162_v32 = vsel %vm160_vm1, %v227_v31, 0.0 }
 0x120   :  { %165 = vadd.xlane.f32.xlu1 %v162_v32 }
 0x1a9   :  { %v164_v33 = vpop.xlane.xlu1 %163 }
 0x1aa   :  { %228 = vrcp.f32 %v164_v33 }
 0x1ad   :  { %v166_v34 = vpop.xlane.xlu1 %165 }
 0x1ae   :  { %230 = vrcp.f32 %v166_v34 }
 0x1b4   :  { %v229_v35 = vpop.eup %228 }
 0x1b5   :  { %v169_v36 = vmul.f32 %v229_v35, %v161_v30 }
 0x1b7   :  { %171 = vst [vmem:[#allocation7] sm:$0xff] %v169_v36 }
 0x1b8   :  { %v231_v37 = vpop.eup %230 }
 0x1b9   :  { %v170_v38 = vmul.f32 %v231_v37, %v162_v32 }
 0x1bb   :  { %172 = vst [vmem:[#allocation7 + $0x8] sm:$0xff] %v170_v38 }
 0x1bc   :  { %287 = shalt.err (!%p284_p6)
}
 0x1bd   :  { %s288_s15 = scalar_lea.hbm %s384_s3, 256 }
 0x1be   :  { %p289_p7 = scmp.ne.s32.totalorder %s384_s3, %s288_s15  ;;  %p292_p8 = scmp.lt.u32.totalorder %s288_s15, %s384_s3 }
 0x1c0   :  { %p294_p9 = pnand %p292_p8, %p289_p7 }
 0x1c2   :  { %297 = shalt.err (!%p294_p9)
}
 0x1c3   :  { %184 = dma.vmem_to_hbm [thread:$0]  %s179_s11, 256, %s384_s3, [#allocation4], %s305_s22, %s305_s22, %s306_s23  }
 0x1c4   :  { %302 = dma.done.wait [#allocation4], 256  }
 0x1c5   :  { %303 = vsyncadd [#allocation4], 4294967040 }
 0x1c6   :  { %188 = vsyncpa [#allocation3], 1 }
 0x1c7   :  { %189 = vsyncpa [#allocation6], 1 }
 0x1c8   :  { %190 = vsyncpa [#allocation4], 1 }

</bundles_post_ra>
